<compile_context>
chip_gen: v6e
topology: v6e:2x2x1
jax: 0.10.0
libtpu: 0.0.40
codegen_flags: <defaults>
</compile_context>

<pallas_src>
import math
import functools

import jax
import jax.numpy as jnp
from jax.experimental import pallas as pl
from jax.experimental.pallas import tpu as pltpu


def _round_up(x, m):
    return (x + m - 1) // m * m


def _emp_bayes_linear_kernel(x_ref, wm_ref, wsp_ref, eps_w_ref,
                             bm_ref, bsp_ref, eps_b_ref, o_ref, acc_ref,
                             *, inv_sqrt_in):
    k = pl.program_id(2)

    @pl.when(k == 0)
    def _():
        acc_ref[...] = jnp.zeros_like(acc_ref)

    # Reparameterized weight sample for this (tn, tk) tile:
    #   w = weight_mean + softplus(param) / sqrt(in_features) * eps
    w_std = jax.nn.softplus(wsp_ref[...]) * inv_sqrt_in
    w = wm_ref[...] + w_std * eps_w_ref[...]              # (tn, tk)

    # x @ w.T without an explicit transpose: contract the in_features axis of
    # both operands directly on the MXU, f32 accumulation.
    acc_ref[...] += jax.lax.dot_general(
        x_ref[...], w,
        dimension_numbers=(((1,), (1,)), ((), ())),
        preferred_element_type=jnp.float32)

    # Bias reparameterization + add only once, at the last K step.
    @pl.when(k == pl.num_programs(2) - 1)
    def _():
        b_std = jax.nn.softplus(bsp_ref[...])
        b = bm_ref[...] + b_std * eps_b_ref[...]          # (1, tn)
        o_ref[...] = (acc_ref[...] + b).astype(o_ref.dtype)


def emp_bayes_linear(x, weight_mean, weight_std_param, eps_w,
                     bias_mean, bias_std_param, eps_b):
    """EmpBayesLinear forward: x (B, in) f32 -> (B, out) f32."""
    batch, in_features = x.shape
    out_features, _ = weight_mean.shape
    dtype = x.dtype

    # Tile sizes: lane-dense last dims (multiples of 128), sublane-aligned M.
    tm = min(_round_up(batch, 8), 128)
    tn = min(_round_up(out_features, 128), 256)
    tk = min(_round_up(in_features, 128), 512)

    m_pad = _round_up(batch, tm)
    n_pad = _round_up(out_features, tn)
    k_pad = _round_up(in_features, tk)

    # Zero-pad to tile multiples. Padded K columns of x are zero, so padded
    # weight columns contribute nothing; padded N rows/cols are sliced off.
    x_p = jnp.pad(x, ((0, m_pad - batch), (0, k_pad - in_features)))
    pad_w = ((0, n_pad - out_features), (0, k_pad - in_features))
    wm_p = jnp.pad(weight_mean, pad_w)
    wsp_p = jnp.pad(weight_std_param, pad_w)
    eps_w_p = jnp.pad(eps_w, pad_w)

    pad_b = ((0, 0), (0, n_pad - out_features))
    bm_p = jnp.pad(bias_mean.reshape(1, out_features), pad_b)
    bsp_p = jnp.pad(bias_std_param.reshape(1, out_features), pad_b)
    eps_b_p = jnp.pad(eps_b.reshape(1, out_features), pad_b)

    kernel = functools.partial(
        _emp_bayes_linear_kernel,
        inv_sqrt_in=1.0 / math.sqrt(float(in_features)),   # original in_features
    )

    grid = (m_pad // tm, n_pad // tn, k_pad // tk)

    # TODO(synk): eps_w could be generated in-kernel with pltpu.prng_seed +
    # pltpu.prng_random_bits to cut the weight-shaped HBM traffic by ~1/3; kept
    # as an explicit input here to preserve the torch.randn_like-as-input
    # semantics and allow an exact reference comparison.
    out_p = pl.pallas_call(
        kernel,
        out_shape=jax.ShapeDtypeStruct((m_pad, n_pad), dtype),
        grid_spec=pltpu.PrefetchScalarGridSpec(
            num_scalar_prefetch=0,
            grid=grid,
            in_specs=[
                pl.BlockSpec((tm, tk), lambda i, j, k: (i, k)),   # x
                pl.BlockSpec((tn, tk), lambda i, j, k: (j, k)),   # weight_mean
                pl.BlockSpec((tn, tk), lambda i, j, k: (j, k)),   # weight_std_param
                pl.BlockSpec((tn, tk), lambda i, j, k: (j, k)),   # eps_w
                pl.BlockSpec((1, tn), lambda i, j, k: (0, j)),    # bias_mean
                pl.BlockSpec((1, tn), lambda i, j, k: (0, j)),    # bias_std_param
                pl.BlockSpec((1, tn), lambda i, j, k: (0, j)),    # eps_b
            ],
            out_specs=pl.BlockSpec((tm, tn), lambda i, j, k: (i, j)),
            scratch_shapes=[pltpu.VMEM((tm, tn), jnp.float32)],
        ),
        compiler_params=pltpu.CompilerParams(
            dimension_semantics=("parallel", "parallel", "arbitrary")),
    )(x_p, wm_p, wsp_p, eps_w_p, bm_p, bsp_p, eps_b_p)

    return out_p[:batch, :out_features]


def reference(x, weight_mean, weight_std_param, eps_w,
              bias_mean, bias_std_param, eps_b, in_features):
    w_std = jax.nn.softplus(weight_std_param) / math.sqrt(float(in_features))
    w = weight_mean + w_std * eps_w
    b_std = jax.nn.softplus(bias_std_param)
    b = bias_mean + b_std * eps_b
    return x @ w.T + b


if __name__ == "__main__":
    key = jax.random.PRNGKey(0)
    batch, in_features, out_features = 8, 32, 16
    init_std = 0.05

    k_x, k_wm, k_bm, k_ew, k_eb = jax.random.split(key, 5)

    # Deterministic parameter init matching reset_parameters(init_std=0.05):
    #   weight_mean ~ N(0, 1/in_features), bias_mean ~ N(0, 1/in_features)
    #   _weight_std_param = _bias_std_param = log(exp(init_std) - 1)
    weight_mean = (1.0 / in_features) * jax.random.normal(
        k_wm, (out_features, in_features), jnp.float32)
    bias_mean = (1.0 / in_features) * jax.random.normal(
        k_bm, (out_features,), jnp.float32)
    std_init_val = math.log(math.exp(init_std) - 1.0)
    weight_std_param = jnp.full((out_features, in_features), std_init_val, jnp.float32)
    bias_std_param = jnp.full((out_features,), std_init_val, jnp.float32)
    # TODO(synk): _prior_std_param only affects the KL/prior terms, not forward(); omitted.

    x = jax.random.normal(k_x, (batch, in_features), jnp.float32)
    eps_w = jax.random.normal(k_ew, (out_features, in_features), jnp.float32)
    eps_b = jax.random.normal(k_eb, (out_features,), jnp.float32)

    out = emp_bayes_linear(x, weight_mean, weight_std_param, eps_w,
                           bias_mean, bias_std_param, eps_b)
    out = jax.block_until_ready(out)

    ref = reference(x, weight_mean, weight_std_param, eps_w,
                    bias_mean, bias_std_param, eps_b, in_features)
    assert out.shape == (batch, out_features)
    assert jnp.allclose(out, ref, atol=1e-5, rtol=1e-5), float(jnp.abs(out - ref).max())

    print("KERNEL_OK")
</pallas_src>

<mosaic_0001>
module attributes {stable_mosaic.version = 11 : i64} {
  func.func @_emp_bayes_linear_kernel(%arg0: i32, %arg1: i32, %arg2: i32, %arg3: memref<8x128xf32, #tpu.memory_space<vmem>>, %arg4: memref<128x128xf32, #tpu.memory_space<vmem>>, %arg5: memref<128x128xf32, #tpu.memory_space<vmem>>, %arg6: memref<128x128xf32, #tpu.memory_space<vmem>>, %arg7: memref<1x128xf32, #tpu.memory_space<vmem>>, %arg8: memref<1x128xf32, #tpu.memory_space<vmem>>, %arg9: memref<1x128xf32, #tpu.memory_space<vmem>>, %arg10: memref<8x128xf32, #tpu.memory_space<vmem>>, %arg11: memref<8x128xf32, #tpu.memory_space<vmem>>) attributes {dimension_semantics = [#tpu.dimension_semantics<parallel>, #tpu.dimension_semantics<parallel>, #tpu.dimension_semantics<arbitrary>], iteration_bounds = array<i64: 1, 1, 1>, scalar_prefetch = 0 : i64, scratch_operands = 1 : i64, tpu.core_type = #tpu.core_type<tc>, window_params = [{transform_indices = @transform_0, window_bounds = array<i64: 8, 128>}, {transform_indices = @transform_1, window_bounds = array<i64: 128, 128>}, {transform_indices = @transform_2, window_bounds = array<i64: 128, 128>}, {transform_indices = @transform_3, window_bounds = array<i64: 128, 128>}, {transform_indices = @transform_4, window_bounds = array<i64: 1, 128>}, {transform_indices = @transform_5, window_bounds = array<i64: 1, 128>}, {transform_indices = @transform_6, window_bounds = array<i64: 1, 128>}, {transform_indices = @transform_7, window_bounds = array<i64: 8, 128>}]} {
    %c0_i32 = arith.constant 0 : i32
    %0 = arith.cmpi eq, %arg2, %c0_i32 : i32
    %1 = arith.extui %0 : i1 to i32
    %c0_i32_0 = arith.constant 0 : i32
    %2 = arith.cmpi ne, %1, %c0_i32_0 : i32
    scf.if %2 {
      %cst_17 = arith.constant 0.000000e+00 : f32
      %32 = vector.broadcast %cst_17 : f32 to vector<8x128xf32>
      %c0_18 = arith.constant 0 : index
      %c0_19 = arith.constant 0 : index
      %33 = vector.load %arg11[%c0_18, %c0_19] : memref<8x128xf32, #tpu.memory_space<vmem>>, vector<8x128xf32>
      tpu.vector_store %arg11[%c0_18, %c0_19], %32 {strides = array<i32>} : memref<8x128xf32, #tpu.memory_space<vmem>>, vector<8x128xf32>,
    } else {
    }
    %c0 = arith.constant 0 : index
    %c0_1 = arith.constant 0 : index
    %3 = vector.load %arg5[%c0, %c0_1] : memref<128x128xf32, #tpu.memory_space<vmem>>, vector<128x128xf32>
    %cst = arith.constant 0.000000e+00 : f32
    %4 = vector.broadcast %cst : f32 to vector<128x128xf32>
    %5 = arith.maximumf %3, %4 : vector<128x128xf32>
    %6 = vector.broadcast %cst : f32 to vector<128x128xf32>
    %7 = arith.subf %3, %6 : vector<128x128xf32>
    %8 = arith.cmpf one, %7, %7 : vector<128x128xf32>
    %9 = vector.broadcast %cst : f32 to vector<128x128xf32>
    %10 = arith.addf %3, %9 : vector<128x128xf32>
    %11 = math.absf %7 : vector<128x128xf32>
    %cst_2 = arith.constant 0.000000e+00 : f32
    %12 = vector.broadcast %cst_2 : f32 to vector<128x128xf32>
    %13 = arith.subf %12, %11 : vector<128x128xf32>
    %14 = math.exp %13 : vector<128x128xf32>
    %15 = math.log1p %14 : vector<128x128xf32>
    %16 = arith.addf %5, %15 : vector<128x128xf32>
    %17 = arith.select %8, %10, %16 : vector<128x128xi1>, vector<128x128xf32>
    %cst_3 = arith.constant 0.176776692 : f32
    %18 = vector.broadcast %cst_3 : f32 to vector<128x128xf32>
    %19 = arith.mulf %17, %18 : vector<128x128xf32>
    %c0_4 = arith.constant 0 : index
    %c0_5 = arith.constant 0 : index
    %20 = vector.load %arg4[%c0_4, %c0_5] : memref<128x128xf32, #tpu.memory_space<vmem>>, vector<128x128xf32>
    %c0_6 = arith.constant 0 : index
    %c0_7 = arith.constant 0 : index
    %21 = vector.load %arg6[%c0_6, %c0_7] : memref<128x128xf32, #tpu.memory_space<vmem>>, vector<128x128xf32>
    %22 = arith.mulf %19, %21 : vector<128x128xf32>
    %23 = arith.addf %20, %22 : vector<128x128xf32>
    %c0_8 = arith.constant 0 : index
    %c0_9 = arith.constant 0 : index
    %24 = vector.load %arg11[%c0_8, %c0_9] : memref<8x128xf32, #tpu.memory_space<vmem>>, vector<8x128xf32>
    %c0_10 = arith.constant 0 : index
    %c0_11 = arith.constant 0 : index
    %25 = vector.load %arg3[%c0_10, %c0_11] : memref<8x128xf32, #tpu.memory_space<vmem>>, vector<8x128xf32>
    %cst_12 = arith.constant dense<0.000000e+00> : vector<8x128xf32>
    %26 = tpu.matmul %25, %23, %cst_12 {dimension_numbers = #tpu.dot_dimension_numbers<[1], [1], [0], [0], [0, 0, 1, 0], [], []>} : vector<8x128xf32>, vector<128x128xf32>, vector<8x128xf32> -> vector<8x128xf32>
    %27 = arith.addf %24, %26 : vector<8x128xf32>
    %c0_13 = arith.constant 0 : index
    %c0_14 = arith.constant 0 : index
    %28 = vector.load %arg11[%c0_13, %c0_14] : memref<8x128xf32, #tpu.memory_space<vmem>>, vector<8x128xf32>
    tpu.vector_store %arg11[%c0_13, %c0_14], %27 {strides = array<i32>} : memref<8x128xf32, #tpu.memory_space<vmem>>, vector<8x128xf32>,
    %c0_i32_15 = arith.constant 0 : i32
    %29 = arith.cmpi eq, %arg2, %c0_i32_15 : i32
    %30 = arith.extui %29 : i1 to i32
    %c0_i32_16 = arith.constant 0 : i32
    %31 = arith.cmpi ne, %30, %c0_i32_16 : i32
    scf.if %31 {
      %c0_17 = arith.constant 0 : index
      %c0_18 = arith.constant 0 : index
      %32 = vector.load %arg8[%c0_17, %c0_18] : memref<1x128xf32, #tpu.memory_space<vmem>>, vector<1x128xf32>
      %cst_19 = arith.constant 0.000000e+00 : f32
      %33 = vector.broadcast %cst_19 : f32 to vector<1x128xf32>
      %34 = arith.maximumf %32, %33 : vector<1x128xf32>
      %35 = vector.broadcast %cst_19 : f32 to vector<1x128xf32>
      %36 = arith.subf %32, %35 : vector<1x128xf32>
      %37 = arith.cmpf one, %36, %36 : vector<1x128xf32>
      %38 = vector.broadcast %cst_19 : f32 to vector<1x128xf32>
      %39 = arith.addf %32, %38 : vector<1x128xf32>
      %40 = math.absf %36 : vector<1x128xf32>
      %cst_20 = arith.constant 0.000000e+00 : f32
      %41 = vector.broadcast %cst_20 : f32 to vector<1x128xf32>
      %42 = arith.subf %41, %40 : vector<1x128xf32>
      %43 = math.exp %42 : vector<1x128xf32>
      %44 = math.log1p %43 : vector<1x128xf32>
      %45 = arith.addf %34, %44 : vector<1x128xf32>
      %46 = arith.select %37, %39, %45 : vector<1x128xi1>, vector<1x128xf32>
      %c0_21 = arith.constant 0 : index
      %c0_22 = arith.constant 0 : index
      %47 = vector.load %arg7[%c0_21, %c0_22] : memref<1x128xf32, #tpu.memory_space<vmem>>, vector<1x128xf32>
      %c0_23 = arith.constant 0 : index
      %c0_24 = arith.constant 0 : index
      %48 = vector.load %arg9[%c0_23, %c0_24] : memref<1x128xf32, #tpu.memory_space<vmem>>, vector<1x128xf32>
      %49 = arith.mulf %46, %48 : vector<1x128xf32>
      %50 = arith.addf %47, %49 : vector<1x128xf32>
      %c0_25 = arith.constant 0 : index
      %c0_26 = arith.constant 0 : index
      %51 = vector.load %arg11[%c0_25, %c0_26] : memref<8x128xf32, #tpu.memory_space<vmem>>, vector<8x128xf32>
      %52 = vector.broadcast %50 : vector<1x128xf32> to vector<8x128xf32>
      %53 = arith.addf %51, %52 : vector<8x128xf32>
      %c0_27 = arith.constant 0 : index
      %c0_28 = arith.constant 0 : index
      %54 = vector.load %arg10[%c0_27, %c0_28] : memref<8x128xf32, #tpu.memory_space<vmem>>, vector<8x128xf32>
      tpu.vector_store %arg10[%c0_27, %c0_28], %53 {strides = array<i32>} : memref<8x128xf32, #tpu.memory_space<vmem>>, vector<8x128xf32>,
    } else {
    }
    return
  }
  func.func @transform_0(%arg0: i32, %arg1: i32, %arg2: i32) -> (i32, i32) {
    %c0_i32 = arith.constant 0 : i32
    return %arg0, %arg2 : i32, i32
  }
  func.func @transform_1(%arg0: i32, %arg1: i32, %arg2: i32) -> (i32, i32) {
    %c0_i32 = arith.constant 0 : i32
    return %arg1, %arg2 : i32, i32
  }
  func.func @transform_2(%arg0: i32, %arg1: i32, %arg2: i32) -> (i32, i32) {
    %c0_i32 = arith.constant 0 : i32
    return %arg1, %arg2 : i32, i32
  }
  func.func @transform_3(%arg0: i32, %arg1: i32, %arg2: i32) -> (i32, i32) {
    %c0_i32 = arith.constant 0 : i32
    return %arg1, %arg2 : i32, i32
  }
  func.func @transform_4(%arg0: i32, %arg1: i32, %arg2: i32) -> (i32, i32) {
    %c0_i32 = arith.constant 0 : i32
    %c0_i32_0 = arith.constant 0 : i32
    return %c0_i32, %arg1 : i32, i32
  }
  func.func @transform_5(%arg0: i32, %arg1: i32, %arg2: i32) -> (i32, i32) {
    %c0_i32 = arith.constant 0 : i32
    %c0_i32_0 = arith.constant 0 : i32
    return %c0_i32, %arg1 : i32, i32
  }
  func.func @transform_6(%arg0: i32, %arg1: i32, %arg2: i32) -> (i32, i32) {
    %c0_i32 = arith.constant 0 : i32
    %c0_i32_0 = arith.constant 0 : i32
    return %c0_i32, %arg1 : i32, i32
  }
  func.func @transform_7(%arg0: i32, %arg1: i32, %arg2: i32) -> (i32, i32) {
    %c0_i32 = arith.constant 0 : i32
    return %arg0, %arg1 : i32, i32
  }
}

</mosaic_0001>

<bundles_post_ra>
// kernel: tpu_custom_call.1
= control target key start
LH: loop header
LB: loop body
LE: loop exit
PB: predicated region body
PF: predicated region fallthrough
CT: control target
= control target key end

     0   :  { %12 = vsyncpa [#allocation4], 0  ;;  %s1248_s0 = inlined_call_operand.hbm [shape: f32[8,128], index: 0, kind: input, shape index: {}]   ;;  %s1249_s1 = inlined_call_operand.hbm [shape: f32[128,128], index: 1, kind: input, shape index: {}]   ;;  %s1250_s2 = inlined_call_operand.hbm [shape: f32[128,128], index: 2, kind: input, shape index: {}]   ;;  %s1251_s3 = inlined_call_operand.hbm [shape: f32[128,128], index: 3, kind: input, shape index: {}]   ;;  %s1252_s4 = inlined_call_operand.vmem [shape: f32[1,128], index: 4, kind: input, shape index: {}]   ;;  %s1253_s5 = inlined_call_operand.vmem [shape: f32[1,128], index: 5, kind: input, shape index: {}]   ;;  %s1254_s6 = inlined_call_operand.vmem [shape: f32[1,128], index: 6, kind: input, shape index: {}]   ;;  %s1255_s7 = inlined_call_operand.hbm [shape: f32[8,128], index: 7, kind: output, shape index: {}]  }
   0x1   :  { %13 = vsyncpa [#allocation7], 0 }
   0x2   :  { %14 = vsyncpa [#allocation10], 0 }
   0x3   :  { %15 = vsyncpa [#allocation5], 0  ;;  %s832_s24 = smov [#allocation6]  }
   0x4   :  { %s31_s25 = sshll.u32 %s832_s24, 4  ;;  %s32_s25 = int_to_ptr.vmem [resolvable:$true] %s31_s25 }
   0x5   :  { %s732_s26 = scalar_lea.vmem %s32_s25, 2048  ;;  %p737_p1 = scmp.lt.s32.totalorder %s32_s25, %s32_s25 }
   0x6   :  { %p733_p0 = scmp.ne.s32.totalorder %s32_s25, %s732_s26  ;;  %p738_p2 = scmp.lt.s32.totalorder %s732_s26, %s732_s26 }
   0x8   :  { %p739_p3 = por %p738_p2, %p737_p1 }
   0xa   :  { %p740_p4 = pnand %p739_p3, %p733_p0 }
   0xc   :  { %743 = shalt.err (!%p740_p4)
}
   0xd   :  { %s833_s27 = smov 128   ;;  %s834_s28 = smov 8  }
   0xe   :  { %37 = dma.hbm_to_vmem [thread:$0]  %s1249_s1, 2048, %s32_s25, [#allocation7], %s833_s27, %s833_s27, %s834_s28  }
   0xf   :  { %s835_s8 = smov [#allocation3]   ;;  %s836_s10 = smov [#allocation8]  }
  0x10   :  { %s22_s9 = sshll.u32 %s835_s8, 4  ;;  %s43_s11 = sshll.u32 %s836_s10, 4  ;;  %s23_s9 = int_to_ptr.vmem [resolvable:$true] %s22_s9  ;;  %s44_s11 = int_to_ptr.vmem [resolvable:$true] %s43_s11 }
  0x11   :  { %s752_s12 = scalar_lea.vmem %s23_s9, 128  ;;  %p757_p6 = scmp.lt.s32.totalorder %s23_s9, %s23_s9 }
  0x12   :  { %p753_p5 = scmp.ne.s32.totalorder %s23_s9, %s752_s12  ;;  %p758_p7 = scmp.lt.s32.totalorder %s752_s12, %s752_s12 }
  0x14   :  { %p759_p8 = por %p758_p7, %p757_p6 }
  0x16   :  { %p760_p9 = pnand %p759_p8, %p753_p5 }
  0x18   :  { %763 = shalt.err (!%p760_p9)
}
  0x19   :  { %25 = dma.hbm_to_vmem [thread:$0]  %s1248_s0, 128, %s23_s9, [#allocation4]  }
  0x1a   :  { %s772_s15 = scalar_lea.vmem %s44_s11, 2048  ;;  %p777_p11 = scmp.lt.s32.totalorder %s44_s11, %s44_s11 }
  0x1b   :  { %p773_p10 = scmp.ne.s32.totalorder %s44_s11, %s772_s15  ;;  %p778_p12 = scmp.lt.s32.totalorder %s772_s15, %s772_s15 }
  0x1d   :  { %p779_p13 = por %p778_p12, %p777_p11 }
  0x1f   :  { %p780_p0 = pnand %p779_p13, %p773_p10 }
  0x21   :  { %783 = shalt.err (!%p780_p0)
}
  0x22   :  { %49 = dma.hbm_to_vmem [thread:$0]  %s1250_s2, 2048, %s44_s11, [#allocation7], %s833_s27, %s833_s27, %s834_s28  }
  0x23   :  { %s837_s17 = smov [#allocation9]  }
  0x24   :  { %s55_s18 = sshll.u32 %s837_s17, 4  ;;  %s56_s18 = int_to_ptr.vmem [resolvable:$true] %s55_s18 }
  0x25   :  { %s792_s19 = scalar_lea.vmem %s56_s18, 2048  ;;  %p797_p2 = scmp.lt.s32.totalorder %s56_s18, %s56_s18 }
  0x26   :  { %p793_p1 = scmp.ne.s32.totalorder %s56_s18, %s792_s19  ;;  %p798_p3 = scmp.lt.s32.totalorder %s792_s19, %s792_s19 }
  0x28   :  { %p799_p4 = por %p798_p3, %p797_p2 }
  0x2a   :  { %p800_p5 = pnand %p799_p4, %p793_p1 }
  0x2c   :  { %803 = shalt.err (!%p800_p5)
}
  0x2d   :  { %61 = dma.hbm_to_vmem [thread:$0]  %s1251_s3, 2048, %s56_s18, [#allocation10], %s833_s27, %s833_s27, %s834_s28  }
  0x2e   :  { %824 = dma.done.wait [#allocation4], 128  }
  0x2f   :  { %825 = vsyncadd [#allocation4], 4294967168 }
  0x30   :  { %826 = dma.done.wait [#allocation7], 4096  }
  0x31   :  { %827 = vsyncadd [#allocation7], 4294963200 }
  0x32   :  { %828 = dma.done.wait [#allocation10], 2048  }
  0x33   :  { %829 = vsyncadd [#allocation10], 4294965248  ;;  %v838_v0 = vmov 0.0   ;;  %vm839_vm0 = vmmov 0   ;;  %v904_v1 = vld [vmem:[#allocation8 + $0x78] sm:$0xff]  ;;  %v907_v3 = vld [vmem:[#allocation8 + $0x70] sm:$0xff] }
  0x34   :  { %612 = vmatprep.subr.mxu0 %v838_v0  ;;  %644 = vmatprep.mubr.msk.f32.mxu0 %vm839_vm0, %v838_v0  ;;  %v164_v2 = vand.u32 2147483647, %v904_v1  ;;  %v163_v4 = vand.u32 2147483647, %v907_v3  ;;  %v910_v5 = vld [vmem:[#allocation8 + $0x68] sm:$0xff]  ;;  %v913_v8 = vld [vmem:[#allocation8 + $0x60] sm:$0xff]  ;;  %vm132_vm1 = vcmp.ne.f32.partialorder %v904_v1, %v904_v1  ;;  %vm131_vm2 = vcmp.ne.f32.partialorder %v907_v3, %v907_v3 }
  0x35   :  { %v162_v7 = vand.u32 2147483647, %v910_v5  ;;  %v161_v10 = vand.u32 2147483647, %v913_v8  ;;  %v916_v11 = vld [vmem:[#allocation8 + $0x58] sm:$0xff]  ;;  %v919_v17 = vld [vmem:[#allocation8 + $0x50] sm:$0xff]  ;;  %vm130_vm4 = vcmp.ne.f32.partialorder %v910_v5, %v910_v5  ;;  %vm129_vm6 = vcmp.ne.f32.partialorder %v913_v8, %v913_v8 }
  0x36   :  { %v180_v6 = vsub.f32 0.0, %v164_v2  ;;  %v179_v9 = vsub.f32 0.0, %v163_v4  ;;  %v160_v16 = vand.u32 2147483647, %v916_v11  ;;  %v921_v19 = vld [vmem:[#allocation8 + $0x48] sm:$0xff]  ;;  %v925_v24 = vld [vmem:[#allocation8 + $0x40] sm:$0xff]  ;;  %vm128_vm11 = vcmp.ne.f32.partialorder %v916_v11, %v916_v11 }
  0x37   :  { %v178_v13 = vsub.f32 0.0, %v162_v7  ;;  %v177_v15 = vsub.f32 0.0, %v161_v10  ;;  %v159_v22 = vand.u32 2147483647, %v919_v17  ;;  %v158_v23 = vand.u32 2147483647, %v921_v19 }
  0x38   :  { %v211_v12 = vmul.f32 1.442695, %v180_v6  ;;  %v209_v14 = vmul.f32 1.442695, %v179_v9  ;;  %v176_v21 = vsub.f32 0.0, %v160_v16  ;;  %v927_v27 = vld [vmem:[#allocation8 + $0x38] sm:$0xff]  ;;  %vm127_vm13 = vcmp.ne.f32.partialorder %v919_v17, %v919_v17 }
  0x39   :  { %v207_v18 = vmul.f32 1.442695, %v178_v13  ;;  %v205_v20 = vmul.f32 1.442695, %v177_v15  ;;  %v175_v26 = vsub.f32 0.0, %v159_v22  ;;  %v174_v28 = vsub.f32 0.0, %v158_v23 }
  0x3a   :  { %656 = vpow2.f32 %v211_v12  ;;  %v203_v25 = vmul.f32 1.442695, %v176_v21  ;;  %v157_v29 = vand.u32 2147483647, %v925_v24  ;;  %v156_v31 = vand.u32 2147483647, %v927_v27 }
  0x3b   :  { %658 = vpow2.f32 %v209_v14  ;;  %v201_v30 = vmul.f32 1.442695, %v175_v26  ;;  %v931_v32 = vld [vmem:[#allocation8 + $0x30] sm:$0xff]  ;;  %v199_v33 = vmul.f32 1.442695, %v174_v28  ;;  %v933_v35 = vld [vmem:[#allocation8 + $0x28] sm:$0xff]  ;;  %vm126_vm14 = vcmp.ne.f32.partialorder %v921_v19, %v921_v19 }
  0x3c   :  { %660 = vpow2.f32 %v207_v18  ;;  %v173_v34 = vsub.f32 0.0, %v157_v29  ;;  %v172_v36 = vsub.f32 0.0, %v156_v31  ;;  %v155_v37 = vand.u32 2147483647, %v931_v32  ;;  %v951_v57 = vld [vmem:[#allocation8 + $0x20] sm:$0xff]  ;;  %v953_v58 = vld [vmem:[#allocation8 + $0x18] sm:$0xff] }
  0x3d   :  { %662 = vpow2.f32 %v205_v20  ;;  %v154_v39 = vand.u32 2147483647, %v933_v35  ;;  %v116_v52 = vmax.f32 %v904_v1, 0.0  ;;  %v115_v54 = vmax.f32 %v907_v3, 0.0  ;;  %s840_s24 = smov [#allocation11]  }
  0x3e   :  { %664 = vpow2.f32 %v203_v25  ;;  %v197_v38 = vmul.f32 1.442695, %v173_v34  ;;  %v195_v40 = vmul.f32 1.442695, %v172_v36  ;;  %v171_v41 = vsub.f32 0.0, %v155_v37  ;;  %s584_s25 = sshll.u32 %s840_s24, 4  ;;  %s585_s25 = int_to_ptr.vmem [resolvable:$true] %s584_s25 }
  0x3f   :  { %666 = vpow2.f32 %v201_v30  ;;  %v170_v42 = vsub.f32 0.0, %v154_v39  ;;  %v114_v55 = vmax.f32 %v910_v5, 0.0  ;;  %v113_v61 = vmax.f32 %v913_v8, 0.0  ;;  %s804_s26 = scalar_lea.vmem %s585_s25, 128  ;;  %p809_p7 = scmp.lt.s32.totalorder %s585_s25, %s585_s25 }
  0x40   :  { %668 = vpow2.f32 %v199_v33  ;;  %v193_v43 = vmul.f32 1.442695, %v171_v41  ;;  %v112_v62 = vmax.f32 %v916_v11, 0.0  ;;  %v111_v6 = vmax.f32 %v919_v17, 0.0  ;;  %p805_p6 = scmp.ne.s32.totalorder %s585_s25, %s804_s26  ;;  %p810_p8 = scmp.lt.s32.totalorder %s804_s26, %s804_s26 }
  0x41   :  { %670 = vpow2.f32 %v197_v38  ;;  %v191_v44 = vmul.f32 1.442695, %v170_v42  ;;  %v110_v10 = vmax.f32 %v921_v19, 0.0  ;;  %v153_v12 = vand.u32 2147483647, %v951_v57 }
  0x42   :  { %672 = vpow2.f32 %v195_v40  ;;  %v152_v13 = vand.u32 2147483647, %v953_v58  ;;  %vm125_vm15 = vcmp.ne.f32.partialorder %v925_v24, %v925_v24  ;;  %p811_p9 = por %p810_p8, %p809_p7 }
  0x43   :  { %674 = vpow2.f32 %v193_v43  ;;  %v992_v38 = vsub.f32 0.0, %v153_v12 }
  0x44   :  { %676 = vpow2.f32 %v191_v44  ;;  %p812_p10 = pnand %p811_p9, %p805_p6 }
  0x47   :  { %v657_v45 = vpop.eup %656 }
  0x48   :  { %v937_v46 = vpop.eup %658  ;;  %v348_v47 = vadd.f32 1.0, %v657_v45  ;;  %v351_v59 = vmul.f32 -0.5, %v657_v45  ;;  %v354_v14 = vand.u32 2147483647, %v657_v45 }
  0x49   :  { %v939_v48 = vpop.eup %660  ;;  %v339_v49 = vadd.f32 1.0, %v937_v46  ;;  %v342_v60 = vmul.f32 -0.5, %v937_v46  ;;  %v345_v22 = vand.u32 2147483647, %v937_v46 }
  0x4a   :  { %v942_v50 = vpop.eup %662  ;;  %678 = vlog2.f32 %v348_v47  ;;  %v330_v51 = vadd.f32 1.0, %v939_v48  ;;  %v333_v2 = vmul.f32 -0.5, %v939_v48  ;;  %v352_v20 = vadd.f32 1.0, %v351_v59 }
  0x4b   :  { %680 = vlog2.f32 %v339_v49  ;;  %v946_v53 = vpop.eup %664  ;;  %v321_v56 = vadd.f32 1.0, %v942_v50  ;;  %v324_v9 = vmul.f32 -0.5, %v942_v50  ;;  %v343_v21 = vadd.f32 1.0, %v342_v60 }
  0x4c   :  { %682 = vlog2.f32 %v330_v51  ;;  %v958_v63 = vpop.eup %666  ;;  %v312_v4 = vadd.f32 1.0, %v946_v53  ;;  %v315_v15 = vmul.f32 -0.5, %v946_v53  ;;  %v334_v25 = vadd.f32 1.0, %v333_v2 }
  0x4d   :  { %684 = vlog2.f32 %v321_v56  ;;  %v963_v7 = vpop.eup %668  ;;  %v303_v16 = vadd.f32 1.0, %v958_v63  ;;  %v336_v26 = vand.u32 2147483647, %v939_v48  ;;  %v306_v28 = vmul.f32 -0.5, %v958_v63 }
  0x4e   :  { %686 = vlog2.f32 %v312_v4  ;;  %v971_v18 = vpop.eup %670  ;;  %v294_v23 = vadd.f32 1.0, %v963_v7  ;;  %v325_v30 = vadd.f32 1.0, %v324_v9  ;;  %v327_v31 = vand.u32 2147483647, %v942_v50 }
  0x4f   :  { %688 = vlog2.f32 %v303_v16  ;;  %v979_v29 = vpop.eup %672  ;;  %v285_v33 = vadd.f32 1.0, %v971_v18  ;;  %vm985_vm3 = vcmp.lt.f32.partialorder %v354_v14, 0.0004427343  ;;  %v316_v36 = vadd.f32 1.0, %v315_v15 }
  0x50   :  { %690 = vlog2.f32 %v294_v23  ;;  %v318_v37 = vand.u32 2147483647, %v946_v53  ;;  %v994_v39 = vpop.eup %674  ;;  %v353_v40 = vmul.f32 %v657_v45, %v352_v20  ;;  %vm996_vm5 = vcmp.lt.f32.partialorder %v345_v22, 0.0004427343 }
  0x51   :  { %v309_v42 = vand.u32 2147483647, %v958_v63  ;;  %v297_v43 = vmul.f32 -0.5, %v963_v7  ;;  %v1002_v44 = vpop.eup %676  ;;  %v344_v47 = vmul.f32 %v937_v46, %v343_v21  ;;  %v307_v49 = vadd.f32 1.0, %v306_v28 }
  0x52   :  { %692 = vlog2.f32 %v285_v33  ;;  %v276_v51 = vadd.f32 1.0, %v979_v29  ;;  %v335_v56 = vmul.f32 %v939_v48, %v334_v25  ;;  %vm1009_vm7 = vcmp.lt.f32.partialorder %v336_v26, 0.0004427343 }
  0x53   :  { %v326_v60 = vmul.f32 %v942_v50, %v325_v30  ;;  %vm1014_vm8 = vcmp.lt.f32.partialorder %v327_v31, 0.0004427343  ;;  %v317_v9 = vmul.f32 %v946_v53, %v316_v36  ;;  %vm1019_vm9 = vcmp.lt.f32.partialorder %v318_v37, 0.0004427343  ;;  %v436_v37 = vld [vmem:[#allocation9 + $0x78] sm:$0xff] }
  0x54   :  { %v300_v48 = vand.u32 2147483647, %v963_v7  ;;  %vm1024_vm10 = vcmp.lt.f32.partialorder %v309_v42, 0.0004427343  ;;  %v298_v50 = vadd.f32 1.0, %v297_v43  ;;  %v267_v20 = vadd.f32 1.0, %v994_v39 }
  0x55   :  { %v308_v53 = vmul.f32 %v958_v63, %v307_v49  ;;  %694 = vlog2.f32 %v276_v51  ;;  %v288_v28 = vmul.f32 -0.5, %v971_v18  ;;  %v258_v30 = vadd.f32 1.0, %v1002_v44  ;;  %v435_v43 = vld [vmem:[#allocation9 + $0x70] sm:$0xff]  ;;  %v420_v51 = vld [vmem:[#allocation6 + $0x78] sm:$0xff] }
  0x56   :  { %vm1044_vm12 = vcmp.lt.f32.partialorder %v300_v48, 0.0004427343  ;;  %696 = vlog2.f32 %v267_v20  ;;  %v434_v48 = vld [vmem:[#allocation9 + $0x68] sm:$0xff]  ;;  %v282_v63 = vand.u32 2147483647, %v979_v29 }
  0x57   :  { %v679_v45 = vpop.eup %678  ;;  %698 = vlog2.f32 %v258_v30  ;;  %v289_v20 = vadd.f32 1.0, %v288_v28  ;;  %v418_v28 = vld [vmem:[#allocation6 + $0x68] sm:$0xff] }
  0x58   :  { %v681_v46 = vpop.eup %680  ;;  %v350_v4 = vmul.f32 0.6931472, %v679_v45 }
  0x59   :  { %v683_v14 = vpop.eup %682  ;;  %v341_v15 = vmul.f32 0.6931472, %v681_v46  ;;  %v419_v46 = vld [vmem:[#allocation6 + $0x70] sm:$0xff] }
  0x5a   :  { %v356_v21 = vsel %vm985_vm3, %v353_v40, %v350_v4  ;;  %v332_v22 = vmul.f32 0.6931472, %v683_v14  ;;  %v685_v23 = vpop.eup %684  ;;  %vm124_vm3 = vcmp.ne.f32.partialorder %v927_v27, %v927_v27 }
  0x5b   :  { %v372_v25 = vadd.f32 %v356_v21, %v116_v52  ;;  %v347_v26 = vsel %vm996_vm5, %v344_v47, %v341_v15  ;;  %v323_v34 = vmul.f32 0.6931472, %v685_v23  ;;  %v687_v36 = vpop.eup %686  ;;  %v1084_v23 = vld [vmem:[#allocation8 + $0x10] sm:$0xff]  ;;  %vm123_vm5 = vcmp.ne.f32.partialorder %v931_v32, %v931_v32 }
  0x5c   :  { %v371_v31 = vadd.f32 %v347_v26, %v115_v54  ;;  %v338_v33 = vsel %vm1009_vm7, %v335_v56, %v332_v22  ;;  %v299_v54 = vmul.f32 %v963_v7, %v298_v50  ;;  %v314_v47 = vmul.f32 0.6931472, %v687_v36  ;;  %v689_v49 = vpop.eup %688  ;;  %v433_v26 = vld [vmem:[#allocation9 + $0x60] sm:$0xff] }
  0x5d   :  { %v388_v52 = vsel %vm132_vm1, %v904_v1, %v372_v25  ;;  %v370_v40 = vadd.f32 %v338_v33, %v114_v55  ;;  %v329_v1 = vsel %vm1014_vm8, %v326_v60, %v323_v34  ;;  %v691_v56 = vpop.eup %690  ;;  %v305_v60 = vmul.f32 0.6931472, %v689_v49 }
  0x5e   :  { %v404_v41 = vmul.f32 0.17677669, %v388_v52  ;;  %v387_v42 = vsel %vm131_vm2, %v907_v3, %v371_v31  ;;  %v369_v45 = vadd.f32 %v329_v1, %v113_v61  ;;  %v320_v2 = vsel %vm1019_vm9, %v317_v9, %v314_v47  ;;  %v432_v1 = vld [vmem:[#allocation9 + $0x58] sm:$0xff] }
  0x5f   :  { %v403_v55 = vmul.f32 0.17677669, %v387_v42  ;;  %v386_v7 = vsel %vm130_vm4, %v910_v5, %v370_v40  ;;  %v368_v5 = vadd.f32 %v320_v2, %v112_v62  ;;  %v296_v61 = vmul.f32 0.6931472, %v691_v56  ;;  %v693_v12 = vpop.eup %692 }
  0x60   :  { %v452_v59 = vmul.f32 %v436_v37, %v404_v41  ;;  %v402_v3 = vmul.f32 0.17677669, %v386_v7  ;;  %v385_v14 = vsel %vm129_vm6, %v913_v8, %v369_v45  ;;  %v311_v50 = vsel %vm1024_vm10, %v308_v53, %v305_v60  ;;  %v417_v41 = vld [vmem:[#allocation6 + $0x60] sm:$0xff]  ;;  %v1125_v60 = vld [vmem:[#allocation8 + $0x8] sm:$0xff] }
  0x61   :  { %v451_v4 = vmul.f32 %v435_v43, %v403_v55  ;;  %v279_v9 = vmul.f32 -0.5, %v979_v29  ;;  %v401_v21 = vmul.f32 0.17677669, %v385_v14  ;;  %v109_v22 = vmax.f32 %v925_v24, 0.0 }
  0x62   :  { %v468_v15 = vadd.f32 %v452_v59, %v420_v51  ;;  %v291_v8 = vand.u32 2147483647, %v971_v18  ;;  %v450_v25 = vmul.f32 %v434_v48, %v402_v3  ;;  %v367_v16 = vadd.f32 %v311_v50, %v111_v6  ;;  %v695_v37 = vpop.eup %694  ;;  %v431_v48 = vld [vmem:[#allocation9 + $0x50] sm:$0xff] }
  0x63   :  { %v467_v62 = vadd.f32 %v451_v4, %v419_v46  ;;  %v168_v53 = vsub.f32 0.0, %v152_v13  ;;  %v384_v30 = vsel %vm128_vm11, %v916_v11, %v368_v5  ;;  %v302_v31 = vsel %vm1044_vm12, %v299_v54, %v296_v61  ;;  %v697_v55 = vpop.eup %696  ;;  %v416_v5 = vld [vmem:[#allocation6 + $0x58] sm:$0xff] }
  0x64   :  { %613 = vmatpush3.xpose.msra.mxu0 %v468_v15  ;;  %v270_v33 = vmul.f32 -0.5, %v994_v39  ;;  %v189_v34 = vmul.f32 1.442695, %v992_v38  ;;  %v287_v6 = vmul.f32 0.6931472, %v693_v12  ;;  %v290_v13 = vmul.f32 %v971_v18, %v289_v20  ;;  %v699_v46 = vpop.eup %698 }
  0x65   :  { %614 = vmatprep.subr.mxu0 %v838_v0  ;;  %v280_v36 = vadd.f32 1.0, %v279_v9  ;;  %v151_v52 = vand.u32 2147483647, %v1084_v23  ;;  %v449_v40 = vmul.f32 %v433_v26, %v401_v21  ;;  %vm1103_vm0 = vcmp.lt.f32.partialorder %v291_v8, 0.0004427343  ;;  %v1137_v9 = vld [vmem:[#allocation8] sm:$0xff] }
  0x66   :  { %v261_v54 = vmul.f32 -0.5, %v1002_v44  ;;  %v466_v38 = vadd.f32 %v450_v25, %v418_v28  ;;  %v400_v42 = vmul.f32 0.17677669, %v384_v30  ;;  %v383_v18 = vsel %vm127_vm13, %v919_v17, %v367_v16  ;;  %v415_v16 = vld [vmem:[#allocation6 + $0x50] sm:$0xff] }
  0x67   :  { %v366_v43 = vadd.f32 %v302_v31, %v110_v10  ;;  %v271_v47 = vadd.f32 1.0, %v270_v33  ;;  %v273_v49 = vand.u32 2147483647, %v994_v39  ;;  %700 = vpow2.f32 %v189_v34  ;;  %v427_v10 = vld [vmem:[#allocation9 + $0x30] sm:$0xff] }
  0x68   :  { %615 = vmatpush3.xpose.msra.mxu0 %v467_v62  ;;  %v187_v51 = vmul.f32 1.442695, %v168_v53  ;;  %v293_v7 = vsel %vm1103_vm0, %v290_v13, %v287_v6  ;;  %v108_v45 = vmax.f32 %v927_v27, 0.0  ;;  %v278_v56 = vmul.f32 0.6931472, %v695_v37  ;;  %v430_v53 = vld [vmem:[#allocation9 + $0x48] sm:$0xff] }
  0x69   :  { %616 = vmatprep.subr.mxu0 %v838_v0  ;;  %v281_v17 = vmul.f32 %v979_v29, %v280_v36  ;;  %v465_v59 = vadd.f32 %v449_v40, %v417_v41  ;;  %v399_v3 = vmul.f32 0.17677669, %v383_v18  ;;  %vm1121_vm1 = vcmp.lt.f32.partialorder %v282_v63, 0.0004427343 }
  0x6a   :  { %v262_v2 = vadd.f32 1.0, %v261_v54  ;;  %v448_v4 = vmul.f32 %v432_v1, %v400_v42  ;;  %v382_v14 = vsel %vm126_vm14, %v921_v19, %v366_v43  ;;  %702 = vpow2.f32 %v187_v51 }
  0x6b   :  { %v167_v29 = vsub.f32 0.0, %v151_v52  ;;  %v365_v61 = vadd.f32 %v293_v7, %v109_v22  ;;  %v269_v15 = vmul.f32 0.6931472, %v697_v55  ;;  %v272_v50 = vmul.f32 %v994_v39, %v271_v47 }
  0x6c   :  { %617 = vmatpush3.xpose.msra.mxu0 %v466_v38  ;;  %vm1133_vm2 = vcmp.lt.f32.partialorder %v273_v49, 0.0004427343  ;;  %v284_v12 = vsel %vm1121_vm1, %v281_v17, %v278_v56  ;;  %v264_v19 = vand.u32 2147483647, %v1002_v44  ;;  %v150_v8 = vand.u32 2147483647, %v1125_v60 }
  0x6d   :  { %618 = vmatprep.subr.mxu0 %v838_v0  ;;  %v185_v21 = vmul.f32 1.442695, %v167_v29  ;;  %v447_v62 = vmul.f32 %v431_v48, %v399_v3  ;;  %v398_v25 = vmul.f32 0.17677669, %v382_v14  ;;  %v107_v22 = vmax.f32 %v931_v32, 0.0  ;;  %v429_v38 = vld [vmem:[#allocation9 + $0x40] sm:$0xff] }
  0x6e   :  { %v263_v39 = vmul.f32 %v1002_v44, %v262_v2  ;;  %v464_v26 = vadd.f32 %v448_v4, %v416_v5  ;;  %v166_v28 = vsub.f32 0.0, %v150_v8  ;;  %v149_v30 = vand.u32 2147483647, %v1137_v9 }
  0x6f   :  { %704 = vpow2.f32 %v185_v21  ;;  %v381_v31 = vsel %vm125_vm15, %v925_v24, %v365_v61  ;;  %v364_v33 = vadd.f32 %v284_v12, %v108_v45  ;;  %v275_v34 = vsel %vm1133_vm2, %v272_v50, %v269_v15  ;;  %v414_v24 = vld [vmem:[#allocation6 + $0x48] sm:$0xff]  ;;  %v428_v45 = vld [vmem:[#allocation9 + $0x38] sm:$0xff]  ;;  %v411_v61 = vld [vmem:[#allocation6 + $0x30] sm:$0xff] }
  0x70   :  { %619 = vmatpush3.xpose.msra.mxu0 %v465_v59  ;;  %v260_v44 = vmul.f32 0.6931472, %v699_v46  ;;  %vm1155_vm4 = vcmp.lt.f32.partialorder %v264_v19, 0.0004427343  ;;  %v183_v13 = vmul.f32 1.442695, %v166_v28  ;;  %v463_v52 = vadd.f32 %v447_v62, %v415_v16 }
  0x71   :  { %620 = vmatprep.subr.mxu0 %v838_v0  ;;  %v165_v36 = vsub.f32 0.0, %v149_v30  ;;  %v446_v37 = vmul.f32 %v430_v53, %v398_v25  ;;  %v106_v40 = vmax.f32 %v933_v35, 0.0  ;;  %v397_v11 = vmul.f32 0.17677669, %v381_v31  ;;  %v412_v46 = vld [vmem:[#allocation6 + $0x38] sm:$0xff]  ;;  %v426_v15 = vld [vmem:[#allocation9 + $0x28] sm:$0xff] }
  0x72   :  { %v363_v63 = vadd.f32 %v275_v34, %v107_v22  ;;  %706 = vpow2.f32 %v183_v13  ;;  %v380_v41 = vsel %vm124_vm3, %v927_v27, %v364_v33  ;;  %v266_v42 = vsel %vm1155_vm4, %v263_v39, %v260_v44  ;;  %v413_v27 = vld [vmem:[#allocation6 + $0x40] sm:$0xff] }
  0x73   :  { %v181_v54 = vmul.f32 1.442695, %v165_v36  ;;  %v462_v43 = vadd.f32 %v446_v37, %v414_v24  ;;  %v445_v47 = vmul.f32 %v429_v38, %v397_v11  ;;  %v396_v49 = vmul.f32 0.17677669, %v380_v41  ;;  %v425_v41 = vld [vmem:[#allocation9 + $0x20] sm:$0xff] }
  0x74   :  { %621 = vmatpush3.xpose.msra.mxu0 %v464_v26  ;;  %v701_v18 = vpop.eup %700  ;;  %v379_v51 = vsel %vm123_vm5, %v931_v32, %v363_v63  ;;  %v362_v55 = vadd.f32 %v266_v42, %v106_v40  ;;  %vm122_vm6 = vcmp.ne.f32.partialorder %v933_v35, %v933_v35  ;;  %v410_v26 = vld [vmem:[#allocation6 + $0x28] sm:$0xff]  ;;  %v105_v30 = vmax.f32 %v951_v57, 0.0 }
  0x75   :  { %622 = vmatprep.subr.mxu0 %v838_v0  ;;  %708 = vpow2.f32 %v181_v54  ;;  %v249_v1 = vadd.f32 1.0, %v701_v18  ;;  %v395_v17 = vmul.f32 0.17677669, %v379_v51  ;;  %v461_v59 = vadd.f32 %v445_v47, %v413_v27 }
  0x76   :  { %v444_v3 = vmul.f32 %v428_v45, %v396_v49  ;;  %v378_v2 = vsel %vm122_vm6, %v933_v35, %v362_v55  ;;  %v252_v4 = vmul.f32 -0.5, %v701_v18  ;;  %v255_v12 = vand.u32 2147483647, %v701_v18 }
  0x77   :  { %v703_v7 = vpop.eup %702  ;;  %710 = vlog2.f32 %v249_v1  ;;  %v443_v14 = vmul.f32 %v427_v10, %v395_v17  ;;  %v394_v29 = vmul.f32 0.17677669, %v378_v2  ;;  %vm121_vm8 = vcmp.ne.f32.partialorder %v951_v57, %v951_v57  ;;  %v424_v17 = vld [vmem:[#allocation9 + $0x18] sm:$0xff] }
  0x78   :  { %623 = vmatpush3.xpose.msra.mxu0 %v463_v52  ;;  %v240_v56 = vadd.f32 1.0, %v703_v7  ;;  %v460_v5 = vadd.f32 %v444_v3, %v412_v46  ;;  %v243_v50 = vmul.f32 -0.5, %v703_v7  ;;  %v253_v35 = vadd.f32 1.0, %v252_v4  ;;  %v408_v4 = vld [vmem:[#allocation6 + $0x18] sm:$0xff] }
  0x79   :  { %624 = vmatprep.subr.mxu0 %v838_v0  ;;  %v459_v8 = vadd.f32 %v443_v14, %v411_v61  ;;  %v442_v62 = vmul.f32 %v426_v15, %v394_v29  ;;  %v246_v53 = vand.u32 2147483647, %v703_v7  ;;  %vm256_vm7 = vcmp.lt.f32.partialorder %v255_v12, 0.0004427343 }
  0x7a   :  { %712 = vlog2.f32 %v240_v56  ;;  %v244_v25 = vadd.f32 1.0, %v243_v50  ;;  %v254_v16 = vmul.f32 %v701_v18, %v253_v35  ;;  %v104_v52 = vmax.f32 %v953_v58, 0.0  ;;  %v423_v35 = vld [vmem:[#allocation9 + $0x10] sm:$0xff] }
  0x7b   :  { %v458_v33 = vadd.f32 %v442_v62, %v410_v26  ;;  %vm1186_vm9 = vcmp.lt.f32.partialorder %v246_v53, 0.0004427343  ;;  %vm120_vm10 = vcmp.ne.f32.partialorder %v953_v58, %v953_v58  ;;  %v103_v54 = vmax.f32 %v1084_v23, 0.0  ;;  %v422_v26 = vld [vmem:[#allocation9 + $0x8] sm:$0xff] }
  0x7c   :  { %625 = vmatpush3.xpose.msra.mxu0 %v462_v43  ;;  %v705_v32 = vpop.eup %704  ;;  %v245_v34 = vmul.f32 %v703_v7, %v244_v25  ;;  %v409_v7 = vld [vmem:[#allocation6 + $0x20] sm:$0xff]  ;;  %vm119_vm12 = vcmp.ne.f32.partialorder %v1084_v23, %v1084_v23  ;;  %v102_v14 = vmax.f32 %v1125_v60, 0.0  ;;  %vm118_vm14 = vcmp.ne.f32.partialorder %v1125_v60, %v1125_v60 }
  0x7d   :  { %626 = vmatprep.subr.mxu0 %v838_v0  ;;  %v231_v48 = vadd.f32 1.0, %v705_v32  ;;  %v234_v22 = vmul.f32 -0.5, %v705_v32  ;;  %v237_v40 = vand.u32 2147483647, %v705_v32  ;;  %vm117_vm0 = vcmp.ne.f32.partialorder %v1137_v9, %v1137_v9 }
  0x7f   :  { %714 = vlog2.f32 %v231_v48  ;;  %v1172_v20 = vpop.eup %706  ;;  %v235_v44 = vadd.f32 1.0, %v234_v22  ;;  %vm1201_vm11 = vcmp.lt.f32.partialorder %v237_v40, 0.0004427343 }
  0x80   :  { %627 = vmatpush3.xpose.msra.mxu0 %v461_v59  ;;  %v222_v19 = vadd.f32 1.0, %v1172_v20  ;;  %v225_v6 = vmul.f32 -0.5, %v1172_v20  ;;  %v228_v55 = vand.u32 2147483647, %v1172_v20 }
  0x81   :  { %628 = vmatprep.subr.mxu0 %v838_v0  ;;  %v236_v18 = vmul.f32 %v705_v32, %v235_v44 }
  0x82   :  { %v1176_v21 = vpop.eup %708  ;;  %716 = vlog2.f32 %v222_v19  ;;  %v226_v43 = vadd.f32 1.0, %v225_v6  ;;  %vm1217_vm13 = vcmp.lt.f32.partialorder %v228_v55, 0.0004427343  ;;  %v566_v55 = vld [vmem:[%s1254_s6] sm:$0x1] }
  0x83   :  { %v213_v39 = vadd.f32 1.0, %v1176_v21  ;;  %v216_v63 = vmul.f32 -0.5, %v1176_v21  ;;  %v219_v59 = vand.u32 2147483647, %v1176_v21 }
  0x84   :  { %629 = vmatpush3.xpose.msra.mxu0 %v460_v5  ;;  %v711_v28 = vpop.eup %710  ;;  %v227_v2 = vmul.f32 %v1172_v20, %v226_v43  ;;  %v101_v20 = vmax.f32 %v1137_v9, 0.0 }
  0x85   :  { %630 = vmatprep.subr.mxu0 %v838_v0  ;;  %718 = vlog2.f32 %v213_v39  ;;  %v251_v31 = vmul.f32 0.6931472, %v711_v28  ;;  %vm220_vm15 = vcmp.lt.f32.partialorder %v219_v59, 0.0004427343 }
  0x87   :  { %v713_v13 = vpop.eup %712  ;;  %v257_v36 = vsel %vm256_vm7, %v254_v16, %v251_v31 }
  0x88   :  { %631 = vmatpush3.xpose.msra.mxu0 %v459_v8  ;;  %v361_v24 = vadd.f32 %v257_v36, %v105_v30  ;;  %v242_v11 = vmul.f32 0.6931472, %v713_v13  ;;  %v406_v30 = vld [vmem:[#allocation6 + $0x8] sm:$0xff]  ;;  %v405_v13 = vld [vmem:[#allocation6] sm:$0xff] }
  0x89   :  { %632 = vmatprep.subr.mxu0 %v838_v0 }
  0x8a   :  { %v377_v38 = vsel %vm121_vm8, %v951_v57, %v361_v24  ;;  %v248_v42 = vsel %vm1186_vm9, %v245_v34, %v242_v11  ;;  %v217_v57 = vadd.f32 1.0, %v216_v63 }
  0x8b   :  { %v393_v47 = vmul.f32 0.17677669, %v377_v38  ;;  %v360_v49 = vadd.f32 %v248_v42, %v104_v52  ;;  %v470_v52 = vld [vmem:[#allocation3] sm:$0xff] }
  0x8c   :  { %633 = vmatpush3.xpose.msra.mxu0 %v458_v33  ;;  %v715_v1 = vpop.eup %714  ;;  %v218_v61 = vmul.f32 %v1176_v21, %v217_v57  ;;  %v407_v21 = vld [vmem:[#allocation6 + $0x10] sm:$0xff]  ;;  %v421_v33 = vld [vmem:[#allocation9] sm:$0xff]  ;;  %v565_v57 = vld [vmem:[%s1252_s4] sm:$0x1] }
  0x8d   :  { %634 = vmatprep.subr.mxu0 %v838_v0  ;;  %v233_v27 = vmul.f32 0.6931472, %v715_v1  ;;  %v441_v45 = vmul.f32 %v425_v41, %v393_v47  ;;  %v376_v56 = vsel %vm120_vm10, %v953_v58, %v360_v49  ;;  %v571_v49 = vlaneseq }
  0x8e   :  { %v392_v3 = vmul.f32 0.17677669, %v376_v56 }
  0x8f   :  { %v239_v10 = vsel %vm1201_vm11, %v236_v18, %v233_v27  ;;  %v717_v32 = vpop.eup %716  ;;  %v457_v46 = vadd.f32 %v441_v45, %v409_v7  ;;  %v572_v27 = vshrl.u32 %v571_v49, 7 }
  0x90   :  { %v359_v48 = vadd.f32 %v239_v10, %v103_v54  ;;  %v440_v29 = vmul.f32 %v424_v17, %v392_v3  ;;  %v224_v5 = vmul.f32 0.6931472, %v717_v32 }
  0x91   :  { %635 = vmatpush3.xpose.msra.mxu0 %v457_v46  ;;  %v573_v56 = vsub.s32 0, %v572_v27 }
  0x92   :  { %v719_v15 = vpop.eup %718  ;;  %v375_v50 = vsel %vm119_vm12, %v1084_v23, %v359_v48  ;;  %636 = vmatprep.subr.mxu0 %v838_v0  ;;  %v456_v12 = vadd.f32 %v440_v29, %v408_v4  ;;  %v230_v8 = vsel %vm1217_vm13, %v227_v2, %v224_v5 }
  0x93   :  { %v391_v19 = vmul.f32 0.17677669, %v375_v50  ;;  %v215_v62 = vmul.f32 0.6931472, %v719_v15  ;;  %v358_v25 = vadd.f32 %v230_v8, %v102_v14 }
  0x95   :  { %v439_v22 = vmul.f32 %v423_v35, %v391_v19  ;;  %v221_v23 = vsel %vm220_vm15, %v218_v61, %v215_v62  ;;  %637 = vmatpush3.xpose.msra.mxu0 %v456_v12  ;;  %v374_v39 = vsel %vm118_vm14, %v1125_v60, %v358_v25 }
  0x96   :  { %v357_v16 = vadd.f32 %v221_v23, %v101_v20  ;;  %638 = vmatprep.subr.mxu0 %v838_v0  ;;  %v390_v28 = vmul.f32 0.17677669, %v374_v39 }
  0x97   :  { %v455_v53 = vadd.f32 %v439_v22, %v407_v21 }
  0x98   :  { %v373_v31 = vsel %vm117_vm0, %v1137_v9, %v357_v16  ;;  %v438_v34 = vmul.f32 %v422_v26, %v390_v28  ;;  %v546_v9 = vld [vmem:[%s1253_s5] sm:$0x1] }
  0x99   :  { %v389_v44 = vmul.f32 0.17677669, %v373_v31  ;;  %639 = vmatpush3.xpose.msra.mxu0 %v455_v53  ;;  %v550_v37 = vand.u32 2147483647, %v546_v9  ;;  %v547_v43 = vmax.f32 %v546_v9, 0.0  ;;  %vm548_vm2 = vcmp.ne.f32.partialorder %v546_v9, %v546_v9 }
  0x9a   :  { %640 = vmatprep.subr.mxu0 %v838_v0  ;;  %v454_v6 = vadd.f32 %v438_v34, %v406_v30 }
  0x9b   :  { %v437_v36 = vmul.f32 %v421_v33, %v389_v44  ;;  %v551_v40 = vsub.f32 0.0, %v550_v37 }
  0x9d   :  { %641 = vmatpush3.xpose.msra.mxu0 %v454_v6  ;;  %v453_v60 = vadd.f32 %v437_v36, %v405_v13  ;;  %v552_v24 = vmul.f32 1.442695, %v551_v40 }
  0x9e   :  { %642 = vmatprep.subr.mxu0 %v838_v0 }
  0x9f   :  { %720 = vpow2.f32 %v552_v24 }
  0xa1   :  { %643 = vmatpush3.xpose.msra.mxu0 %v453_v60 }
  0xa4   :  { %645 = vmatmul.mubr.f32.vlgmr.msra.gmra.mxu0 %v470_v52 }
  0xac   :  { %v721_v11 = vpop.eup %720 }
  0xad   :  { %v554_v63 = vadd.f32 1.0, %v721_v11  ;;  %v557_v54 = vmul.f32 -0.5, %v721_v11  ;;  %v560_v42 = vand.u32 2147483647, %v721_v11 }
  0xaf   :  { %722 = vlog2.f32 %v554_v63  ;;  %v558_v38 = vadd.f32 1.0, %v557_v54  ;;  %vm561_vm1 = vcmp.lt.f32.partialorder %v560_v42, 0.0004427343 }
  0xb1   :  { %v559_v0 = vmul.f32 %v721_v11, %v558_v38 }
  0xbc   :  { %v723_v41 = vpop.eup %722 }
  0xbd   :  { %v556_v18 = vmul.f32 0.6931472, %v723_v41 }
  0xbf   :  { %v562_v1 = vsel %vm561_vm1, %v559_v0, %v556_v18 }
  0xc0   :  { %v563_v47 = vadd.f32 %v562_v1, %v547_v43 }
  0xc2   :  { %v564_v51 = vsel %vm548_vm2, %v546_v9, %v563_v47 }
  0xc3   :  { %v567_v7 = vmul.f32 %v566_v55, %v564_v51 }
  0xc5   :  { %v568_v45 = vadd.f32 %v567_v7, %v565_v57 }
  0xc7   :  { %v574_v17 = vrot.slane %v568_v45, %v573_v56 }
 0x164   :  { %v537_v59 = vpop.f32.mrf.mxu0 }
 0x165   :  { %v576_v3 = vadd.f32 %v574_v17, %v537_v59 }
 0x166   :  { %v646_v10 = vpop.f32.mrf.mxu0 }
 0x167   :  { %577 = vst [vmem:[#allocation11] sm:$0xff] %v576_v3 }
 0x168   :  { %815 = shalt.err (!%p812_p10)
}
 0x169   :  { %587 = dma.vmem_to_hbm [thread:$0]  %s585_s25, 128, %s1255_s7, [#allocation5]  }
 0x16a   :  { %830 = dma.done.wait [#allocation5], 128  }
 0x16b   :  { %831 = vsyncadd [#allocation5], 4294967168 }
 0x16c   :  { %591 = vsyncpa [#allocation4], 1 }
 0x16d   :  { %592 = vsyncpa [#allocation7], 1 }
 0x16e   :  { %593 = vsyncpa [#allocation10], 1 }
 0x16f   :  { %594 = vsyncpa [#allocation5], 1 }

</bundles_post_ra>
